<compile_context>
chip_gen: v7x
topology: tpu7x:2x2x1
jax: 0.10.0
libtpu: 0.0.40
codegen_flags: <defaults>
</compile_context>

<pallas_src>
import functools

import jax
import jax.numpy as jnp
from jax import lax
from jax.experimental import pallas as pl
from jax.experimental.pallas import tpu as pltpu

# ROI_HEADS config (cfg.MODEL.ROI_HEADS.*), fixed deterministically in-script.
NUM_CLASSES = 16
IOU_THRESHOLDS = (0.3, 0.5)        # Matcher thresholds (low, high)
IOU_LABELS = (0, -1, 1)            # [-inf,low)->0(bg), [low,high)->-1(ignore), [high,inf)->1(fg)
BATCH_SIZE_PER_IMAGE = 64          # only used by stochastic subsampling (see TODO below)
POSITIVE_FRACTION = 0.25

_CLS_BITS = 5                      # class ids packed into the low 5 bits of the argmin key
assert NUM_CLASSES < (1 << _CLS_BITS), "class-id packing requires num_classes < 32"


def _roi_match_kernel(gt_boxes_ref, gt_cls_ref, prop_boxes_ref, out_ref, *,
                      num_classes, thr_low, thr_high, cls_bits):
    """One (image, proposal-tile) grid step.

    gt_boxes_ref   : (1, M, 4) f32   XYXY rows, sublane-major
    gt_cls_ref     : (1, M, 1) i32
    prop_boxes_ref : (1, 4, T) f32   coordinate-major [x0, y0, x1, y1]
    out_ref        : (1, 3, T) i32   rows: [matched_idx, matched_label, assigned_class]
    """
    M = gt_boxes_ref.shape[1]

    # gt coords as (M, 1) sublane vectors (free slices — already sublane-major).
    gx0 = gt_boxes_ref[0, :, 0:1]
    gy0 = gt_boxes_ref[0, :, 1:2]
    gx1 = gt_boxes_ref[0, :, 2:3]
    gy1 = gt_boxes_ref[0, :, 3:4]

    # proposal coords as (1, T) lane vectors (free slices — lane-major).
    px0 = prop_boxes_ref[0, 0:1, :]
    py0 = prop_boxes_ref[0, 1:2, :]
    px1 = prop_boxes_ref[0, 2:3, :]
    py1 = prop_boxes_ref[0, 3:4, :]

    area_gt = (gx1 - gx0) * (gy1 - gy0)          # (M, 1)
    area_pr = (px1 - px0) * (py1 - py0)          # (1, T)

    iw = jnp.maximum(jnp.minimum(gx1, px1) - jnp.maximum(gx0, px0), 0.0)
    ih = jnp.maximum(jnp.minimum(gy1, py1) - jnp.maximum(gy0, py0), 0.0)
    inter = iw * ih                              # (M, T)
    union = area_gt + area_pr - inter
    # Exact divide kept on purpose: the 0.3 / 0.5 threshold + argmax path is
    # sensitive and must match the torch reference bit-for-bit at boundaries.
    iou = jnp.where(inter > 0, inter / union, jnp.zeros_like(inter))

    # Matcher: max over the gt (sublane) axis — one XLU reduction.
    matched_vals = jnp.max(iou, axis=0, keepdims=True)                      # (1, T)

    # Fused first-occurrence argmax + class gather:
    #   key = gt_idx * 2^cls_bits + gt_class ; min over rows where iou == max.
    cls_mult = 1 << cls_bits
    gt_iota = lax.broadcasted_iota(jnp.int32, iou.shape, 0)                 # (M, T)
    keys = gt_iota * cls_mult + gt_cls_ref[0]                               # (M, T)
    sentinel = jnp.int32(M * cls_mult + (cls_mult - 1))
    packed = jnp.min(jnp.where(iou == matched_vals, keys, sentinel),
                     axis=0, keepdims=True).astype(jnp.int32)               # (1, T)
    matched_idxs = packed >> cls_bits                                       # (1, T)
    gathered_cls = packed & (cls_mult - 1)                                  # (1, T)

    # Threshold bucketing -> matcher labels, then bg/ignore class overrides
    # (this is the class-assignment part of ROIHeads._sample_proposals).
    lab = jnp.where(matched_vals >= thr_high, jnp.int32(1),
                    jnp.where(matched_vals >= thr_low, jnp.int32(-1), jnp.int32(0)))
    cls = jnp.where(lab == 0, jnp.int32(num_classes), gathered_cls)
    cls = jnp.where(lab == -1, jnp.int32(-1), cls)

    # Packed (3, T) lane-dense output slab -> single output DMA per tile.
    out_ref[0, 0:1, :] = matched_idxs
    out_ref[0, 1:2, :] = lab
    out_ref[0, 2:3, :] = cls


def roi_heads_label_proposals(gt_boxes, proposal_boxes, gt_classes, *, tile_n=2048):
    """Batched proposal labeling.

    gt_boxes       : (B, M, 4) f32  XYXY
    proposal_boxes : (B, 4, N) f32  coordinate-major [x0, y0, x1, y1] rows
    gt_classes     : (B, M)    i32

    Returns (matched_idxs, matched_labels, assigned_classes), each (B, N) i32.
    """
    B, M, _ = gt_boxes.shape
    _, _, N = proposal_boxes.shape
    # TODO(synk): the M == 0 (no ground truth) branch of _sample_proposals is a
    # separate special case in detectron2 and is not traced through this kernel.
    assert M > 0, "empty ground-truth branch not supported by this kernel"

    gt_boxes = jnp.asarray(gt_boxes, jnp.float32)
    proposal_boxes = jnp.asarray(proposal_boxes, jnp.float32)
    gt_cls = jnp.asarray(gt_classes, jnp.int32)[..., None]                  # (B, M, 1)

    # Tile the proposal (lane) axis; pad N up to a tile multiple if needed.
    if N <= tile_n:
        tile_n = N
        n_pad = N
    else:
        tile_n = max(128, (tile_n // 128) * 128)
        n_pad = pl.cdiv(N, tile_n) * tile_n
        if n_pad != N:
            proposal_boxes = jnp.pad(proposal_boxes, ((0, 0), (0, 0), (0, n_pad - N)))

    kernel = functools.partial(
        _roi_match_kernel,
        num_classes=NUM_CLASSES,
        thr_low=IOU_THRESHOLDS[0],
        thr_high=IOU_THRESHOLDS[1],
        cls_bits=_CLS_BITS,
    )

    grid = (B, n_pad // tile_n)
    packed = pl.pallas_call(
        kernel,
        out_shape=jax.ShapeDtypeStruct((B, 3, n_pad), jnp.int32),
        grid_spec=pltpu.PrefetchScalarGridSpec(
            num_scalar_prefetch=0,
            grid=grid,
            in_specs=[
                # gt operands: same tiny block every proposal-tile step (stay resident).
                pl.BlockSpec((1, M, 4), lambda b, t: (b, 0, 0)),
                pl.BlockSpec((1, M, 1), lambda b, t: (b, 0, 0)),
                pl.BlockSpec((1, 4, tile_n), lambda b, t: (b, 0, t)),
            ],
            out_specs=pl.BlockSpec((1, 3, tile_n), lambda b, t: (b, 0, t)),
        ),
        compiler_params=pltpu.CompilerParams(
            # Image and proposal-tile axes are fully independent -> megacore-shardable.
            dimension_semantics=("parallel", "parallel")),
    )(gt_boxes, gt_cls, proposal_boxes)

    matched_idxs = packed[:, 0, :N]
    matched_labels = packed[:, 1, :N]
    assigned_cls = packed[:, 2, :N]

    # TODO(synk): subsample_labels (random fg/bg sampling with torch.randperm and
    # BATCH_SIZE_PER_IMAGE / POSITIVE_FRACTION) is stochastic, data-dependent
    # index selection with no clean Pallas equivalent; not reproduced here.
    return matched_idxs, matched_labels, assigned_cls


def _reference_single(gt_boxes, prop_cm, gt_classes):
    """Pure-JAX reference of detectron2 pairwise_iou + Matcher + class assignment.

    gt_boxes: (M, 4), prop_cm: (4, N), gt_classes: (M,)
    """
    gx0, gy0, gx1, gy1 = [gt_boxes[:, i:i + 1] for i in range(4)]
    px0, py0, px1, py1 = [prop_cm[i][None, :] for i in range(4)]
    area_gt = (gx1 - gx0) * (gy1 - gy0)
    area_pr = (px1 - px0) * (py1 - py0)
    iw = jnp.maximum(jnp.minimum(gx1, px1) - jnp.maximum(gx0, px0), 0.0)
    ih = jnp.maximum(jnp.minimum(gy1, py1) - jnp.maximum(gy0, py0), 0.0)
    inter = iw * ih
    iou = jnp.where(inter > 0, inter / (area_gt + area_pr - inter), 0.0)
    matched_vals = iou.max(axis=0)
    matched_idxs = jnp.argmax(iou, axis=0).astype(jnp.int32)
    lab = jnp.where(matched_vals >= IOU_THRESHOLDS[1], 1,
                    jnp.where(matched_vals >= IOU_THRESHOLDS[0], -1, 0)).astype(jnp.int32)
    cls = gt_classes[matched_idxs]
    cls = jnp.where(lab == 0, NUM_CLASSES, cls)
    cls = jnp.where(lab == -1, -1, cls).astype(jnp.int32)
    return matched_idxs, lab, cls


if __name__ == "__main__":
    key = jax.random.PRNGKey(0)
    kg1, kg2, kp1, kp2, kc = jax.random.split(key, 5)

    B, M, N = 2, 8, 512          # images, gt boxes per image, proposals per image
    TILE_N = 256                 # exercises the proposal-tile grid (2 tiles/image)

    # gt boxes: (B, M, 4) XYXY, sublane-major.
    gt_xy = jax.random.uniform(kg1, (B, M, 2), jnp.float32, 0.0, 64.0)
    gt_wh = jax.random.uniform(kg2, (B, M, 2), jnp.float32, 4.0, 32.0)
    gt_boxes = jnp.concatenate([gt_xy, gt_xy + gt_wh], axis=-1)

    # proposals generated directly coordinate-major (B, 4, N): no host transpose.
    pr_xy = jax.random.uniform(kp1, (B, 2, N), jnp.float32, 0.0, 64.0)
    pr_wh = jax.random.uniform(kp2, (B, 2, N), jnp.float32, 4.0, 32.0)
    proposal_boxes = jnp.concatenate([pr_xy, pr_xy + pr_wh], axis=1)

    gt_classes = jax.random.randint(kc, (B, M), 0, NUM_CLASSES, jnp.int32)

    midx, mlab, mcls = roi_heads_label_proposals(
        gt_boxes, proposal_boxes, gt_classes, tile_n=TILE_N)
    jax.block_until_ready((midx, mlab, mcls))

    r_idx, r_lab, r_cls = jax.vmap(_reference_single)(gt_boxes, proposal_boxes, gt_classes)
    assert jnp.array_equal(midx, r_idx), "matched_idxs mismatch"
    assert jnp.array_equal(mlab, r_lab), "matched_labels mismatch"
    assert jnp.array_equal(mcls, r_cls), "gt_classes mismatch"

    print("KERNEL_OK")
</pallas_src>

<mosaic_0001>
module attributes {stable_mosaic.version = 11 : i64} {
  func.func @_roi_match_kernel(%arg0: i32, %arg1: i32, %arg2: memref<1x8x4xf32, #tpu.memory_space<vmem>>, %arg3: memref<1x8x1xi32, #tpu.memory_space<vmem>>, %arg4: memref<1x4x256xf32, #tpu.memory_space<vmem>>, %arg5: memref<1x3x256xi32, #tpu.memory_space<vmem>>) attributes {dimension_semantics = [#tpu.dimension_semantics<parallel>, #tpu.dimension_semantics<parallel>], iteration_bounds = array<i64: 2, 2>, scalar_prefetch = 0 : i64, scratch_operands = 0 : i64, tpu.core_type = #tpu.core_type<tc>, window_params = [{transform_indices = @transform_0, window_bounds = array<i64: 1, 8, 4>}, {transform_indices = @transform_1, window_bounds = array<i64: 1, 8, 1>}, {transform_indices = @transform_2, window_bounds = array<i64: 1, 4, 256>}, {transform_indices = @transform_3, window_bounds = array<i64: 1, 3, 256>}]} {
    %c0 = arith.constant 0 : index
    %c0_0 = arith.constant 0 : index
    %c0_1 = arith.constant 0 : index
    %0 = vector.load %arg2[%c0, %c0_0, %c0_1] : memref<1x8x4xf32, #tpu.memory_space<vmem>>, vector<1x8x1xf32>
    %1 = vector.shape_cast %0 : vector<1x8x1xf32> to vector<8x1xf32>
    %c0_2 = arith.constant 0 : index
    %c0_3 = arith.constant 0 : index
    %c1 = arith.constant 1 : index
    %2 = vector.load %arg2[%c0_2, %c0_3, %c1] : memref<1x8x4xf32, #tpu.memory_space<vmem>>, vector<1x8x1xf32>
    %3 = vector.shape_cast %2 : vector<1x8x1xf32> to vector<8x1xf32>
    %c0_4 = arith.constant 0 : index
    %c0_5 = arith.constant 0 : index
    %c2 = arith.constant 2 : index
    %4 = vector.load %arg2[%c0_4, %c0_5, %c2] : memref<1x8x4xf32, #tpu.memory_space<vmem>>, vector<1x8x1xf32>
    %5 = vector.shape_cast %4 : vector<1x8x1xf32> to vector<8x1xf32>
    %c0_6 = arith.constant 0 : index
    %c0_7 = arith.constant 0 : index
    %c3 = arith.constant 3 : index
    %6 = vector.load %arg2[%c0_6, %c0_7, %c3] : memref<1x8x4xf32, #tpu.memory_space<vmem>>, vector<1x8x1xf32>
    %7 = vector.shape_cast %6 : vector<1x8x1xf32> to vector<8x1xf32>
    %c0_8 = arith.constant 0 : index
    %c0_9 = arith.constant 0 : index
    %c0_10 = arith.constant 0 : index
    %8 = vector.load %arg4[%c0_8, %c0_9, %c0_10] : memref<1x4x256xf32, #tpu.memory_space<vmem>>, vector<1x1x256xf32>
    %9 = vector.shape_cast %8 : vector<1x1x256xf32> to vector<1x256xf32>
    %c0_11 = arith.constant 0 : index
    %c1_12 = arith.constant 1 : index
    %c0_13 = arith.constant 0 : index
    %10 = vector.load %arg4[%c0_11, %c1_12, %c0_13] : memref<1x4x256xf32, #tpu.memory_space<vmem>>, vector<1x1x256xf32>
    %11 = vector.shape_cast %10 : vector<1x1x256xf32> to vector<1x256xf32>
    %c0_14 = arith.constant 0 : index
    %c2_15 = arith.constant 2 : index
    %c0_16 = arith.constant 0 : index
    %12 = vector.load %arg4[%c0_14, %c2_15, %c0_16] : memref<1x4x256xf32, #tpu.memory_space<vmem>>, vector<1x1x256xf32>
    %13 = vector.shape_cast %12 : vector<1x1x256xf32> to vector<1x256xf32>
    %c0_17 = arith.constant 0 : index
    %c3_18 = arith.constant 3 : index
    %c0_19 = arith.constant 0 : index
    %14 = vector.load %arg4[%c0_17, %c3_18, %c0_19] : memref<1x4x256xf32, #tpu.memory_space<vmem>>, vector<1x1x256xf32>
    %15 = vector.shape_cast %14 : vector<1x1x256xf32> to vector<1x256xf32>
    %16 = arith.subf %5, %1 : vector<8x1xf32>
    %17 = arith.subf %7, %3 : vector<8x1xf32>
    %18 = arith.mulf %16, %17 : vector<8x1xf32>
    %19 = arith.subf %13, %9 : vector<1x256xf32>
    %20 = arith.subf %15, %11 : vector<1x256xf32>
    %21 = arith.mulf %19, %20 : vector<1x256xf32>
    %22 = vector.broadcast %5 : vector<8x1xf32> to vector<8x256xf32>
    %23 = vector.broadcast %13 : vector<1x256xf32> to vector<8x256xf32>
    %24 = arith.minimumf %22, %23 : vector<8x256xf32>
    %25 = vector.broadcast %1 : vector<8x1xf32> to vector<8x256xf32>
    %26 = vector.broadcast %9 : vector<1x256xf32> to vector<8x256xf32>
    %27 = arith.maximumf %25, %26 : vector<8x256xf32>
    %28 = arith.subf %24, %27 : vector<8x256xf32>
    %cst = arith.constant 0.000000e+00 : f32
    %29 = vector.broadcast %cst : f32 to vector<8x256xf32>
    %30 = arith.maximumf %28, %29 : vector<8x256xf32>
    %31 = vector.broadcast %7 : vector<8x1xf32> to vector<8x256xf32>
    %32 = vector.broadcast %15 : vector<1x256xf32> to vector<8x256xf32>
    %33 = arith.minimumf %31, %32 : vector<8x256xf32>
    %34 = vector.broadcast %3 : vector<8x1xf32> to vector<8x256xf32>
    %35 = vector.broadcast %11 : vector<1x256xf32> to vector<8x256xf32>
    %36 = arith.maximumf %34, %35 : vector<8x256xf32>
    %37 = arith.subf %33, %36 : vector<8x256xf32>
    %cst_20 = arith.constant 0.000000e+00 : f32
    %38 = vector.broadcast %cst_20 : f32 to vector<8x256xf32>
    %39 = arith.maximumf %37, %38 : vector<8x256xf32>
    %40 = arith.mulf %30, %39 : vector<8x256xf32>
    %41 = vector.broadcast %18 : vector<8x1xf32> to vector<8x256xf32>
    %42 = vector.broadcast %21 : vector<1x256xf32> to vector<8x256xf32>
    %43 = arith.addf %41, %42 : vector<8x256xf32>
    %44 = arith.subf %43, %40 : vector<8x256xf32>
    %cst_21 = arith.constant 0.000000e+00 : f32
    %45 = vector.broadcast %cst_21 : f32 to vector<8x256xf32>
    %46 = arith.cmpf ogt, %40, %45 : vector<8x256xf32>
    %47 = arith.divf %40, %44 : vector<8x256xf32>
    %cst_22 = arith.constant 0.000000e+00 : f32
    %48 = vector.broadcast %cst_22 : f32 to vector<8x256xf32>
    %49 = arith.select %46, %47, %48 : vector<8x256xi1>, vector<8x256xf32>
    %cst_23 = arith.constant dense<0xFF800000> : vector<256xf32>
    %50 = vector.multi_reduction <maximumf>, %49, %cst_23 [0] : vector<8x256xf32> to vector<256xf32>
    %51 = vector.shape_cast %50 : vector<256xf32> to vector<1x256xf32>
    %52 = tpu.iota {dimensions = array<i32: 0>} : vector<8x256xi32>
    %c32_i32 = arith.constant 32 : i32
    %53 = vector.broadcast %c32_i32 : i32 to vector<8x256xi32>
    %54 = arith.muli %52, %53 : vector<8x256xi32>
    %c0_24 = arith.constant 0 : index
    %c0_25 = arith.constant 0 : index
    %c0_26 = arith.constant 0 : index
    %55 = vector.load %arg3[%c0_24, %c0_25, %c0_26] : memref<1x8x1xi32, #tpu.memory_space<vmem>>, vector<1x8x1xi32>
    %56 = vector.shape_cast %55 : vector<1x8x1xi32> to vector<8x1xi32>
    %57 = vector.broadcast %56 : vector<8x1xi32> to vector<8x256xi32>
    %58 = arith.addi %54, %57 : vector<8x256xi32>
    %59 = vector.broadcast %51 : vector<1x256xf32> to vector<8x256xf32>
    %60 = arith.cmpf oeq, %49, %59 : vector<8x256xf32>
    %c287_i32 = arith.constant 287 : i32
    %61 = vector.broadcast %c287_i32 : i32 to vector<8x256xi32>
    %62 = arith.select %60, %58, %61 : vector<8x256xi1>, vector<8x256xi32>
    %cst_27 = arith.constant dense<2147483647> : vector<256xi32>
    %63 = vector.multi_reduction <minsi>, %62, %cst_27 [0] : vector<8x256xi32> to vector<256xi32>
    %64 = vector.shape_cast %63 : vector<256xi32> to vector<1x256xi32>
    %c5_i32 = arith.constant 5 : i32
    %65 = vector.broadcast %c5_i32 : i32 to vector<1x256xi32>
    %66 = arith.shrsi %64, %65 : vector<1x256xi32>
    %c31_i32 = arith.constant 31 : i32
    %67 = vector.broadcast %c31_i32 : i32 to vector<1x256xi32>
    %68 = arith.andi %64, %67 : vector<1x256xi32>
    %cst_28 = arith.constant 5.000000e-01 : f32
    %69 = vector.broadcast %cst_28 : f32 to vector<1x256xf32>
    %70 = arith.cmpf oge, %51, %69 : vector<1x256xf32>
    %cst_29 = arith.constant 3.000000e-01 : f32
    %71 = vector.broadcast %cst_29 : f32 to vector<1x256xf32>
    %72 = arith.cmpf oge, %51, %71 : vector<1x256xf32>
    %c-1_i32 = arith.constant -1 : i32
    %c0_i32 = arith.constant 0 : i32
    %73 = vector.broadcast %c-1_i32 : i32 to vector<1x256xi32>
    %74 = vector.broadcast %c0_i32 : i32 to vector<1x256xi32>
    %75 = arith.select %72, %73, %74 : vector<1x256xi1>, vector<1x256xi32>
    %c1_i32 = arith.constant 1 : i32
    %76 = vector.broadcast %c1_i32 : i32 to vector<1x256xi32>
    %77 = arith.select %70, %76, %75 : vector<1x256xi1>, vector<1x256xi32>
    %c0_i32_30 = arith.constant 0 : i32
    %78 = vector.broadcast %c0_i32_30 : i32 to vector<1x256xi32>
    %79 = arith.cmpi eq, %77, %78 : vector<1x256xi32>
    %c16_i32 = arith.constant 16 : i32
    %80 = vector.broadcast %c16_i32 : i32 to vector<1x256xi32>
    %81 = arith.select %79, %80, %68 : vector<1x256xi1>, vector<1x256xi32>
    %c-1_i32_31 = arith.constant -1 : i32
    %82 = vector.broadcast %c-1_i32_31 : i32 to vector<1x256xi32>
    %83 = arith.cmpi eq, %77, %82 : vector<1x256xi32>
    %c-1_i32_32 = arith.constant -1 : i32
    %84 = vector.broadcast %c-1_i32_32 : i32 to vector<1x256xi32>
    %85 = arith.select %83, %84, %81 : vector<1x256xi1>, vector<1x256xi32>
    %c0_33 = arith.constant 0 : index
    %c0_34 = arith.constant 0 : index
    %c0_35 = arith.constant 0 : index
    %86 = vector.load %arg5[%c0_33, %c0_34, %c0_35] : memref<1x3x256xi32, #tpu.memory_space<vmem>>, vector<1x1x256xi32>
    %87 = vector.shape_cast %86 : vector<1x1x256xi32> to vector<1x256xi32>
    %88 = vector.shape_cast %66 : vector<1x256xi32> to vector<1x1x256xi32>
    tpu.vector_store %arg5[%c0_33, %c0_34, %c0_35], %88 {strides = array<i32>} : memref<1x3x256xi32, #tpu.memory_space<vmem>>, vector<1x1x256xi32>,
    %c0_36 = arith.constant 0 : index
    %c1_37 = arith.constant 1 : index
    %c0_38 = arith.constant 0 : index
    %89 = vector.load %arg5[%c0_36, %c1_37, %c0_38] : memref<1x3x256xi32, #tpu.memory_space<vmem>>, vector<1x1x256xi32>
    %90 = vector.shape_cast %89 : vector<1x1x256xi32> to vector<1x256xi32>
    %91 = vector.shape_cast %77 : vector<1x256xi32> to vector<1x1x256xi32>
    tpu.vector_store %arg5[%c0_36, %c1_37, %c0_38], %91 {strides = array<i32>} : memref<1x3x256xi32, #tpu.memory_space<vmem>>, vector<1x1x256xi32>,
    %c0_39 = arith.constant 0 : index
    %c2_40 = arith.constant 2 : index
    %c0_41 = arith.constant 0 : index
    %92 = vector.load %arg5[%c0_39, %c2_40, %c0_41] : memref<1x3x256xi32, #tpu.memory_space<vmem>>, vector<1x1x256xi32>
    %93 = vector.shape_cast %92 : vector<1x1x256xi32> to vector<1x256xi32>
    %94 = vector.shape_cast %85 : vector<1x256xi32> to vector<1x1x256xi32>
    tpu.vector_store %arg5[%c0_39, %c2_40, %c0_41], %94 {strides = array<i32>} : memref<1x3x256xi32, #tpu.memory_space<vmem>>, vector<1x1x256xi32>,
    return
  }
  func.func @transform_0(%arg0: i32, %arg1: i32) -> (i32, i32, i32) {
    %c0_i32 = arith.constant 0 : i32
    %c0_i32_0 = arith.constant 0 : i32
    %c0_i32_1 = arith.constant 0 : i32
    return %arg0, %c0_i32, %c0_i32_0 : i32, i32, i32
  }
  func.func @transform_1(%arg0: i32, %arg1: i32) -> (i32, i32, i32) {
    %c0_i32 = arith.constant 0 : i32
    %c0_i32_0 = arith.constant 0 : i32
    %c0_i32_1 = arith.constant 0 : i32
    return %arg0, %c0_i32, %c0_i32_0 : i32, i32, i32
  }
  func.func @transform_2(%arg0: i32, %arg1: i32) -> (i32, i32, i32) {
    %c0_i32 = arith.constant 0 : i32
    %c0_i32_0 = arith.constant 0 : i32
    return %arg0, %c0_i32, %arg1 : i32, i32, i32
  }
  func.func @transform_3(%arg0: i32, %arg1: i32) -> (i32, i32, i32) {
    %c0_i32 = arith.constant 0 : i32
    %c0_i32_0 = arith.constant 0 : i32
    return %arg0, %c0_i32, %arg1 : i32, i32, i32
  }
}

</mosaic_0001>

<bundles_post_ra>
// kernel: tpu_custom_call.1
= control target key start
LH: loop header
LB: loop body
LE: loop exit
PB: predicated region body
PF: predicated region fallthrough
CT: control target
= control target key end

     0   :  { %s745_s12 = smov 0   ;;  %s747_s13 = smov 0   ;;  %s843_s0 = inlined_call_operand.vmem [shape: f32[2,8,4], index: 0, kind: input, shape index: {}]   ;;  %s844_s1 = inlined_call_operand.vmem [shape: s32[2,8,1], index: 1, kind: input, shape index: {}]   ;;  %s845_s2 = inlined_call_operand.vmem [shape: f32[2,4,512], index: 2, kind: input, shape index: {}]   ;;  %s846_s3 = inlined_call_operand.vmem [shape: s32[2,3,512], index: 3, kind: output, shape index: {}]  }
   0x1   :  { %s749_s14 = smov 0   ;;  %s751_s15 = smov 0  }
   0x2   :  { %s753_s16 = smov 0  }
   0x3 LB: > { %s22_s17 = sadd.s32 1, %s708_s14  ;;  %s25_s18 = sadd.s32 1, %s712_s15  ;;  %s716_s16 = sphi %s753_s16, %s13_s16   ;;  %s712_s15 = sphi %s751_s15, %s852_s15   ;;  %s708_s14 = sphi %s749_s14, %s851_s14   ;;  %s704_s13 = sphi %s747_s13, %s850_s13   ;;  %s700_s12 = sphi %s745_s12, %s849_s12  }
   0x4   : > { %p23_p0 = scmp.ge.s32.totalorder %s22_s17, 2  ;;  %p605_p1 = scmp.ge.s32.totalorder %s716_s16, 1 }
   0x5   : > { %p176_p2 = scmp.lt.s32.totalorder %s716_s16, 5 }
   0x6   : > { %s854_s17 = smov (%p23_p0, %s22_s17), 0  ;;  %s856_s18 = smov (!%p23_p0, %s25_s18), %s712_s15 }
   0x7   : > { %p177_p3 = pnand %p605_p1, %p176_p2  ;;  %p27_p4 = scmp.ge.s32.totalorder %s856_s18, 2 }
   0x8   : > { %p216_p5 = scmp.lt.s32.totalorder (!%p177_p3), %s704_s13, 1  ;;  %v718_v0 = vmov (!%p177_p3), 2   ;;  %v719_v1 = vmov (!%p177_p3), 3   ;;  %s720_s23 = smov (!%p177_p3), 2   ;;  %v721_v3 = vmov (!%p177_p3), 0   ;;  %v722_v4 = vmov (!%p177_p3), 1  }
   0x9   : > { %s858_s18 = smov (%p27_p4, %s856_s18), 0  ;;  %180 = sbr.rel (%p177_p3) target bundleno = 438 (0x1b6), region = 32 }
   0xa   : > { %668 = vset.pattern.permute.xlu1 (!%p177_p3), %v718_v0  ;;  %670 = vset.pattern.permute.xlu0 (!%p177_p3), %v719_v1  ;;  %s723_s24 = smov (!%p177_p3), 127   ;;  %s608_s28 = sshll.u32 (!%p177_p3), %s700_s12, 1  ;;  %v270_v10 = vlaneseq (!%p177_p3) }
   0xb   : > { %p227_p6 = scmp.lt.s32.totalorder (!%p177_p3), %s608_s28, 3 }
   0xc   : > { %v794_v12 = vshrl.u32 (!%p177_p3), %v270_v10, 7  ;;  %vm815_vm10 = vcmp.lt.s32.totalorder (!%p177_p3), %v270_v10, 256 }
   0xe   : > { %v272_v13 = vsub.s32 (!%p177_p3), 0, %v794_v12  ;;  %v276_v14 = vsub.s32 (!%p177_p3), 1, %v794_v12 }
  0x10   : > { %s860_s13 = smov (!%p216_p5, %s704_s13), 1  ;;  %s862_s28 = smov (!%p227_p6, %s608_s28), 3 }
  0x11   : > { %s606_s19 = sshll.u32 %s860_s13, 3  ;;  %s609_s29 = sshll.u32 %s860_s13, 2 }
  0x12   : > { %s219_s22 = scalar_lea.vmem %s843_s0, %s606_s19  ;;  %s223_s27 = scalar_lea.vmem %s844_s1, %s606_s19 }
  0x13   : > { %v244_v2 = vld [vmem:[%s219_s22] sm:$0xff]  ;;  %s790_s30 = sadd.s32 %s609_s29, %s862_s28 }
  0x14   : > { %253 = vrot.lane.b32.xlu0 %v244_v2, %s720_s23  ;;  %266 = vperm.xlu1 %668, %v244_v2   ;;  %v386_v7 = vld [vmem:[%s223_s27] sm:$0xff]  ;;  %s610_s4 = sshll.u32 %s790_s30, 2 }
  0x15   : > { %s232_s7 = scalar_lea.vmem %s845_s2, %s610_s4  ;;  %s812_s10 = scalar_lea.vmem %s846_s3, %s610_s4 }
  0x16   : > { %v615_v16 = vld [vmem:[%s232_s7 + $0x2] ss:$4 sm:$0x3]  ;;  %v245_v17 = vld [vmem:[%s232_s7] ss:$4 sm:$0x3] }
  0x17   : > { %v614_v18 = vld [vmem:[%s232_s7 + $0x1] ss:$4 sm:$0x3]  ;;  %v616_v19 = vld [vmem:[%s232_s7 + $0x3] ss:$4 sm:$0x3]  ;;  %v273_v20 = vrot.slane %v615_v16, %v272_v13  ;;  %v277_v21 = vrot.slane %v615_v16, %v276_v14  ;;  %v290_v22 = vrot.slane %v245_v17, %v272_v13  ;;  %v294_v23 = vrot.slane %v245_v17, %v276_v14 }
  0x18   : > { %669 = vset.pattern.permute.xlu1 %v721_v3  ;;  %v328_v24 = vrot.slane %v614_v18, %v272_v13  ;;  %v332_v25 = vrot.slane %v614_v18, %v276_v14  ;;  %v311_v26 = vrot.slane %v616_v19, %v272_v13  ;;  %v315_v27 = vrot.slane %v616_v19, %v276_v14 }
  0x19   : > { %283 = vperm.xlu1 %669, %v244_v2   ;;  %v262_v30 = vsub.f32 %v615_v16, %v245_v17  ;;  %v263_v31 = vsub.f32 %v616_v19, %v614_v18 }
  0x1b   : > { %v264_v40 = vmul.f32 %v263_v31, %v262_v30 }
  0x1d   : > { %671 = vset.pattern.permute.xlu1 %v722_v4  ;;  %v352_v45 = vrot.slane %v264_v40, %v272_v13  ;;  %v356_v46 = vrot.slane %v264_v40, %v276_v14 }
  0x1e   : > { %321 = vperm.xlu1 %671, %v244_v2  }
  0x22   : > { %672 = vset.pattern.permute.xlu1 %v718_v0 }
  0x86   : > { %v254_v5 = vpop.permute.xlu0 %253 }
  0x87   : > { %v256_v6 = vsub.f32 %v244_v2, %v254_v5 }
  0x89   : > { %258 = vrot.lane.b32.xlu0 %v256_v6, %s723_s24 }
  0x8d   : > { %304 = vperm.xlu0 %670, %v244_v2  }
  0x91   : > { %673 = vset.pattern.permute.xlu0 %v721_v3 }
  0x92   : > { %388 = vperm.xlu0 %673, %v386_v7  }
  0x93   : > { %v267_v11 = vpop.permute.xlu1 %266 }
  0x94   : > { %v280_v32 = vmin.f32 %v267_v11, %v273_v20  ;;  %v281_v33 = vmin.f32 %v267_v11, %v277_v21  ;;  %v385_v11 = vmul.u32 32, %v794_v12 }
  0x98   : > { %v284_v15 = vpop.permute.xlu1 %283 }
  0x99   : > { %v297_v34 = vmax.f32 %v284_v15, %v290_v22  ;;  %v298_v35 = vmax.f32 %v284_v15, %v294_v23 }
  0x9b   : > { %v299_v41 = vsub.f32 %v280_v32, %v297_v34  ;;  %v300_v42 = vsub.f32 %v281_v33, %v298_v35 }
  0x9d   : > { %v322_v28 = vpop.permute.xlu1 %321  ;;  %v301_v47 = vmax.f32 %v299_v41, 0.0  ;;  %v302_v48 = vmax.f32 %v300_v42, 0.0 }
  0x9e   : > { %v335_v36 = vmax.f32 %v322_v28, %v328_v24  ;;  %v336_v37 = vmax.f32 %v322_v28, %v332_v25 }
  0xfb   : > { %v259_v8 = vpop.permute.xlu0 %258 }
  0xfc   : > { %v261_v9 = vmul.f32 %v259_v8, %v256_v6  ;;  %v724_v6 = vmov 1966171168  }
  0xfd   : > { %v435_v7 = vunpack.c.l.s4 %v724_v6 }
  0xfe   : > { %345 = vperm.xlu1 %672, %v261_v9  }
  0xff   : > { %v436_v16 = vunpack.c.0.s8 %v435_v7 }
 0x101   : > { %v439_v21 = vsub.s32 %v436_v16, %v794_v12 }
 0x10c   : > { %v305_v29 = vpop.permute.xlu0 %304 }
 0x10d   : > { %v318_v38 = vmin.f32 %v305_v29, %v311_v26  ;;  %v319_v39 = vmin.f32 %v305_v29, %v315_v27 }
 0x10f   : > { %v337_v43 = vsub.f32 %v318_v38, %v335_v36  ;;  %v338_v44 = vsub.f32 %v319_v39, %v336_v37 }
 0x111   : > { %v339_v49 = vmax.f32 %v337_v43, 0.0  ;;  %v340_v50 = vmax.f32 %v338_v44, 0.0  ;;  %v389_v14 = vpop.permute.xlu0 %388 }
 0x112   : > { %v390_v19 = vadd.s32 %v389_v14, %v385_v11 }
 0x113   : > { %v341_v52 = vmul.f32 %v339_v49, %v301_v47  ;;  %v342_v53 = vmul.f32 %v340_v50, %v302_v48 }
 0x115   : > { %vm363_vm0 = vcmp.gt.f32.partialorder %v341_v52, 0.0  ;;  %vm364_vm1 = vcmp.gt.f32.partialorder %v342_v53, 0.0 }
 0x17d   : > { %v346_v51 = vpop.permute.xlu1 %345 }
 0x17e   : > { %v359_v54 = vadd.f32 %v352_v45, %v346_v51  ;;  %v360_v55 = vadd.f32 %v356_v46, %v346_v51 }
 0x180   : > { %v361_v56 = vsub.f32 %v359_v54, %v341_v52  ;;  %v362_v57 = vsub.f32 %v360_v55, %v342_v53 }
 0x182   : > { %674 = vrcp.f32 %v361_v56 }
 0x183   : > { %676 = vrcp.f32 %v362_v57 }
 0x18c   : > { %v675_v58 = vpop.eup %674 }
 0x18d   : > { %v677_v59 = vpop.eup %676  ;;  %v366_v60 = vmul.f32 %v675_v58, %v341_v52 }
 0x18e   : > { %v368_v61 = vmul.f32 %v677_v59, %v342_v53 }
 0x18f   : > { %v369_v62 = vsel %vm363_vm0, %v366_v60, 0.0 }
 0x190   : > { %v370_v63 = vsel %vm364_vm1, %v368_v61, 0.0  ;;  %v371_v0 = vrot.slane %v369_v62, 4 }
 0x191   : > { %v377_v1 = vrot.slane %v370_v63, 4 }
 0x192   : > { %v372_v2 = vmax.f32 %v369_v62, %v371_v0 }
 0x193   : > { %v378_v4 = vmax.f32 %v370_v63, %v377_v1 }
 0x194   : > { %v373_v5 = vrot.slane %v372_v2, 2 }
 0x195   : > { %v379_v8 = vrot.slane %v378_v4, 2 }
 0x196   : > { %v374_v9 = vmax.f32 %v372_v2, %v373_v5 }
 0x197   : > { %v380_v13 = vmax.f32 %v378_v4, %v379_v8 }
 0x198   : > { %v375_v15 = vrot.slane %v374_v9, 1 }
 0x199   : > { %v381_v17 = vrot.slane %v380_v13, 1 }
 0x19a   : > { %v376_v18 = vmax.f32 %v374_v9, %v375_v15 }
 0x19b   : > { %v382_v20 = vmax.f32 %v380_v13, %v381_v17 }
 0x19c   : > { %vm391_vm2 = vcmp.eq.f32.partialorder %v369_v62, %v376_v18  ;;  %vm417_vm3 = vcmp.ge.f32.partialorder %v376_v18, 0.5  ;;  %vm419_vm4 = vcmp.ge.f32.partialorder %v376_v18, 0.3 }
 0x19d   : > { %vm392_vm5 = vcmp.eq.f32.partialorder %v370_v63, %v382_v20  ;;  %vm418_vm6 = vcmp.ge.f32.partialorder %v382_v20, 0.5  ;;  %vm420_vm7 = vcmp.ge.f32.partialorder %v382_v20, 0.3  ;;  %v421_v22 = vsel %vm419_vm4, 4294967295, %v721_v3 }
 0x19e   : > { %v422_v23 = vsel %vm420_vm7, 4294967295, %v721_v3  ;;  %v423_v24 = vsel %vm417_vm3, 1, %v421_v22  ;;  %v393_v25 = vsel %vm391_vm2, %v390_v19, 287  ;;  %v394_v26 = vsel %vm392_vm5, %v390_v19, 287 }
 0x19f   : > { %v424_v27 = vsel %vm418_vm6, 1, %v422_v23  ;;  %v395_v28 = vrot.slane %v393_v25, 4  ;;  %v404_v30 = vrot.slane %v394_v26, 4  ;;  %vm425_vm15 = vcmp.eq.s32.totalorder %v423_v24, 0 }
 0x1a0   : > { %v453_v29 = vcombine.low %v423_v24, %v424_v27  ;;  %vm426_vm0 = vcmp.eq.s32.totalorder %v424_v27, 0  ;;  %vm429_vm1 = vcmp.eq.s32.totalorder %v423_v24, 4294967295  ;;  %vm430_vm2 = vcmp.eq.s32.totalorder %v424_v27, 4294967295 }
 0x1a1   : > { %vm396_vm8 = vcmp.lt.s32.totalorder %v393_v25, %v395_v28  ;;  %vm405_vm9 = vcmp.lt.s32.totalorder %v394_v26, %v404_v30 }
 0x1a2   : > { %v460_v31 = vrot.slane %v453_v29, %v439_v21  ;;  %v397_v32 = vsel %vm396_vm8, %v393_v25, %v395_v28  ;;  %v406_v33 = vsel %vm405_vm9, %v394_v26, %v404_v30 }
 0x1a3   : > { %v398_v12 = vrot.slane %v397_v32, 2  ;;  %v407_v35 = vrot.slane %v406_v33, 2 }
 0x1a4   : > { %v467_v34 = vrot.slane %v460_v31, %v439_v21 }
 0x1a5   : > { %vm399_vm11 = vcmp.lt.s32.totalorder %v397_v32, %v398_v12  ;;  %vm408_vm12 = vcmp.lt.s32.totalorder %v406_v33, %v407_v35 }
 0x1a6   : > { %617 = vst.msk [vmem:[%s812_s10 + $0x1] ss:$4 sm:$0x3] %vm815_vm10, %v467_v34  ;;  %v400_v36 = vsel %vm399_vm11, %v397_v32, %v398_v12  ;;  %v409_v38 = vsel %vm408_vm12, %v406_v33, %v407_v35 }
 0x1a7   : > { %v401_v37 = vrot.slane %v400_v36, 1  ;;  %v410_v39 = vrot.slane %v409_v38, 1 }
 0x1a9   : > { %vm402_vm13 = vcmp.lt.s32.totalorder %v400_v36, %v401_v37  ;;  %vm411_vm14 = vcmp.lt.s32.totalorder %v409_v38, %v410_v39 }
 0x1aa   : > { %v403_v40 = vsel %vm402_vm13, %v400_v36, %v401_v37  ;;  %v412_v10 = vsel %vm411_vm14, %v409_v38, %v410_v39 }
 0x1ab   : > { %v413_v41 = vshra.s32 %v403_v40, 5  ;;  %v415_v42 = vand.u32 31, %v403_v40  ;;  %v414_v43 = vshra.s32 %v412_v10, 5  ;;  %v416_v44 = vand.u32 31, %v412_v10 }
 0x1ad   : > { %v427_v45 = vsel %vm425_vm15, 16, %v415_v42  ;;  %v428_v46 = vsel %vm426_vm0, 16, %v416_v44  ;;  %v433_v48 = vcombine.low %v413_v41, %v414_v43 }
 0x1ae   : > { %v431_v47 = vsel %vm429_vm1, 4294967295, %v427_v45  ;;  %v432_v49 = vsel %vm430_vm2, 4294967295, %v428_v46 }
 0x1af   : > { %v440_v50 = vrot.slane %v433_v48, %v439_v21  ;;  %v470_v51 = vcombine.low %v431_v47, %v432_v49 }
 0x1b1   : > { %v447_v52 = vrot.slane %v440_v50, %v439_v21  ;;  %v477_v53 = vrot.slane %v470_v51, %v439_v21 }
 0x1b3   : > { %452 = vst.msk [vmem:[%s812_s10] ss:$4 sm:$0x3] %vm815_vm10, %v447_v52  ;;  %v484_v54 = vrot.slane %v477_v53, %v439_v21 }
 0x1b5   : > { %618 = vst.msk [vmem:[%s812_s10 + $0x2] ss:$4 sm:$0x3] %vm815_vm10, %v484_v54 }
 0x1b6 PF: > { %s13_s16 = sadd.s32 1, %s716_s16   ;;  %s849_s12 = smov %s708_s14 }
 0x1b7   : > { %p10_p7 = scmp.ge.s32.totalorder %s13_s16, 6   ;;  %s850_s13 = smov %s712_s15 }
 0x1b8   : > { %s851_s14 = smov %s854_s17  ;;  %s852_s15 = smov %s858_s18 }
 0x1b9   :  { %12 = sbr.rel (!%p10_p7) target bundleno = 3 (0x3), region = 73 }

</bundles_post_ra>
